<compile_context>
chip_gen: v7x
topology: tpu7x:2x2x1
jax: 0.10.0
libtpu: 0.0.40
codegen_flags: <defaults>
</compile_context>

<pallas_src>
import math

import jax
import jax.numpy as jnp
from jax.experimental import pallas as pl
from jax.experimental.pallas import tpu as pltpu


def _outconv_kernel(x_ref, w_ref, b_ref, o_ref):
    # x_ref: (BN, C_in, THW)   w_ref: (C_out, C_in)   b_ref: (C_out, 1)
    # o_ref: (BN, C_out, THW)  -> lane-dense output (THW on the 128-lane axis)
    w = w_ref[...]
    b = b_ref[...]
    for i in range(x_ref.shape[0]):          # static unroll over the batch block (BN <= 8)
        acc = jnp.dot(w, x_ref[i], preferred_element_type=jnp.float32) + b
        # sigmoid(z) = 0.5 * (tanh(0.5*z) + 1): a single EUP transcendental.
        o_ref[i] = (0.5 * jnp.tanh(0.5 * acc) + 0.5).astype(o_ref.dtype)


def outconv_pallas(x_nchw, weight, bias, *, max_spatial_tile=131072, max_batch_block=8):
    """1x1 conv + sigmoid, NCHW in / NCHW out.

    x_nchw : (N, C_in, H, W)
    weight : (C_out, C_in)   (the (C_out, C_in, 1, 1) conv weight squeezed)
    bias   : (C_out,)
    returns: (N, C_out, H, W), same dtype as x
    """
    N, C_in, H, W = x_nchw.shape
    C_out = weight.shape[0]
    HW = H * W
    dtype = x_nchw.dtype

    # Free reshapes only — no transpose, no pad.
    x = x_nchw.reshape(N, C_in, HW)
    w = weight.astype(jnp.float32)
    b2 = bias.reshape(C_out, 1).astype(jnp.float32)

    # --- Tile selection ---------------------------------------------------------
    # VMEM budget: keep the double-buffered in+out working set under ~24 MiB
    # (default scoped VMEM limit is 32 MiB on v6e/v7x); clamp the spatial tile.
    itemsize = jnp.dtype(dtype).itemsize
    budget_elems = (24 * 1024 * 1024) // (2 * (C_in + C_out) * itemsize)
    max_tile = min(int(max_spatial_tile), int(budget_elems))
    max_tile = max(128, (max_tile // 128) * 128)

    if HW <= max_tile:
        # Whole image fits one spatial tile (full-extent block is always legal).
        thw = HW
        # Block batches per step to amortize the ~0.35us fixed per-step cost.
        bn = min(N, max_batch_block, max(1, max_tile // max(HW, 1)))
        # Keep >= 2 grid steps when N allows it so both v7x TensorCores get work.
        if N > 1:
            bn = min(bn, max(1, N // 2))
    else:
        # Large image: one batch element per step, large 128-multiple spatial tile;
        # the cdiv grid masks the ragged tail on writeback.
        thw = max_tile
        bn = 1

    grid = (pl.cdiv(N, bn), pl.cdiv(HW, thw))

    out = pl.pallas_call(
        _outconv_kernel,
        out_shape=jax.ShapeDtypeStruct((N, C_out, HW), dtype),
        grid_spec=pltpu.PrefetchScalarGridSpec(
            num_scalar_prefetch=0,
            grid=grid,
            in_specs=[
                pl.BlockSpec((bn, C_in, thw), lambda nb, sb: (nb, 0, sb)),
                pl.BlockSpec((C_out, C_in), lambda nb, sb: (0, 0)),
                pl.BlockSpec((C_out, 1), lambda nb, sb: (0, 0)),
            ],
            out_specs=pl.BlockSpec((bn, C_out, thw), lambda nb, sb: (nb, 0, sb)),
        ),
        compiler_params=pltpu.CompilerParams(
            # Both grid axes are independent -> shard across TCs on v7x megacore.
            dimension_semantics=("parallel", "parallel")),
    )(x, w, b2)

    return out.reshape(N, C_out, H, W)


def init_outconv_params(key, in_channels, out_channels, slope=0.01):
    # kaiming_normal_(a=slope, mode='fan_in', nonlinearity='leaky_relu'):
    #   gain = sqrt(2 / (1 + a^2)), std = gain / sqrt(fan_in), fan_in = C_in*1*1
    gain = math.sqrt(2.0 / (1.0 + slope * slope))
    std = gain / math.sqrt(in_channels)
    weight = std * jax.random.normal(key, (out_channels, in_channels), jnp.float32)
    bias = jnp.zeros((out_channels,), jnp.float32)      # nn.init.constant_(bias, 0.0)
    return weight, bias


def _reference(x, weight, bias):
    return jax.nn.sigmoid(
        jnp.einsum("nchw,oc->nohw", x, weight) + bias[None, :, None, None]
    )


if __name__ == "__main__":
    key = jax.random.PRNGKey(0)
    k_x, k_w, k_x2, k_x3 = jax.random.split(key, 4)

    # Primary small test (matches the module's intended use).
    N, C_in, H, W = 2, 4, 16, 16
    C_out = 3
    x = jax.random.normal(k_x, (N, C_in, H, W), jnp.float32)
    weight, bias = init_outconv_params(k_w, C_in, C_out)

    y = outconv_pallas(x, weight, bias)
    y = jax.block_until_ready(y)
    assert y.shape == (N, C_out, H, W)
    assert jnp.allclose(y, _reference(x, weight, bias), atol=1e-5, rtol=1e-5)

    # Ragged batch block (N=5 -> BN=2, last block masked on writeback).
    x2 = jax.random.normal(k_x2, (5, C_in, 16, 16), jnp.float32)
    y2 = jax.block_until_ready(outconv_pallas(x2, weight, bias))
    assert jnp.allclose(y2, _reference(x2, weight, bias), atol=1e-5, rtol=1e-5)

    # Ragged spatial tail (HW=400, forced thw=128 -> 4 spatial blocks, masked tail).
    x3 = jax.random.normal(k_x3, (1, C_in, 20, 20), jnp.float32)
    y3 = jax.block_until_ready(outconv_pallas(x3, weight, bias, max_spatial_tile=128))
    assert jnp.allclose(y3, _reference(x3, weight, bias), atol=1e-5, rtol=1e-5)

    print("KERNEL_OK")
</pallas_src>

<mosaic_0001>
module attributes {stable_mosaic.version = 11 : i64} {
  func.func @_outconv_kernel(%arg0: i32, %arg1: i32, %arg2: memref<1x4x256xf32, #tpu.memory_space<vmem>>, %arg3: memref<3x4xf32, #tpu.memory_space<vmem>>, %arg4: memref<3x1xf32, #tpu.memory_space<vmem>>, %arg5: memref<1x3x256xf32, #tpu.memory_space<vmem>>) attributes {dimension_semantics = [#tpu.dimension_semantics<parallel>, #tpu.dimension_semantics<parallel>], iteration_bounds = array<i64: 2, 1>, scalar_prefetch = 0 : i64, scratch_operands = 0 : i64, tpu.core_type = #tpu.core_type<tc>, window_params = [{transform_indices = @transform_0, window_bounds = array<i64: 1, 4, 256>}, {pipeline_mode = #tpu.pipeline_mode<synchronous>, transform_indices = @transform_1, window_bounds = array<i64: 3, 4>}, {pipeline_mode = #tpu.pipeline_mode<synchronous>, transform_indices = @transform_2, window_bounds = array<i64: 3, 1>}, {transform_indices = @transform_3, window_bounds = array<i64: 1, 3, 256>}]} {
    %c0 = arith.constant 0 : index
    %c0_0 = arith.constant 0 : index
    %0 = vector.load %arg3[%c0, %c0_0] : memref<3x4xf32, #tpu.memory_space<vmem>>, vector<3x4xf32>
    %c0_1 = arith.constant 0 : index
    %c0_2 = arith.constant 0 : index
    %1 = vector.load %arg4[%c0_1, %c0_2] : memref<3x1xf32, #tpu.memory_space<vmem>>, vector<3x1xf32>
    %c0_3 = arith.constant 0 : index
    %c0_4 = arith.constant 0 : index
    %c0_5 = arith.constant 0 : index
    %2 = vector.load %arg2[%c0_3, %c0_4, %c0_5] : memref<1x4x256xf32, #tpu.memory_space<vmem>>, vector<1x4x256xf32>
    %3 = vector.shape_cast %2 : vector<1x4x256xf32> to vector<4x256xf32>
    %cst = arith.constant dense<0.000000e+00> : vector<3x256xf32>
    %4 = tpu.matmul %0, %3, %cst {dimension_numbers = #tpu.dot_dimension_numbers<[1], [0], [0], [1], [0, 0, 1, 1], [], []>} : vector<3x4xf32>, vector<4x256xf32>, vector<3x256xf32> -> vector<3x256xf32>
    %5 = vector.broadcast %1 : vector<3x1xf32> to vector<3x256xf32>
    %6 = arith.addf %4, %5 : vector<3x256xf32>
    %cst_6 = arith.constant 5.000000e-01 : f32
    %7 = vector.broadcast %cst_6 : f32 to vector<3x256xf32>
    %8 = arith.mulf %7, %6 : vector<3x256xf32>
    %9 = math.tanh %8 : vector<3x256xf32>
    %cst_7 = arith.constant 5.000000e-01 : f32
    %10 = vector.broadcast %cst_7 : f32 to vector<3x256xf32>
    %11 = arith.mulf %10, %9 : vector<3x256xf32>
    %cst_8 = arith.constant 5.000000e-01 : f32
    %12 = vector.broadcast %cst_8 : f32 to vector<3x256xf32>
    %13 = arith.addf %11, %12 : vector<3x256xf32>
    %c0_9 = arith.constant 0 : index
    %c0_10 = arith.constant 0 : index
    %c0_11 = arith.constant 0 : index
    %14 = vector.load %arg5[%c0_9, %c0_10, %c0_11] : memref<1x3x256xf32, #tpu.memory_space<vmem>>, vector<1x3x256xf32>
    %15 = vector.shape_cast %14 : vector<1x3x256xf32> to vector<3x256xf32>
    %16 = vector.shape_cast %13 : vector<3x256xf32> to vector<1x3x256xf32>
    tpu.vector_store %arg5[%c0_9, %c0_10, %c0_11], %16 {strides = array<i32>} : memref<1x3x256xf32, #tpu.memory_space<vmem>>, vector<1x3x256xf32>,
    return
  }
  func.func @transform_0(%arg0: i32, %arg1: i32) -> (i32, i32, i32) {
    %c0_i32 = arith.constant 0 : i32
    %c0_i32_0 = arith.constant 0 : i32
    return %arg0, %c0_i32, %arg1 : i32, i32, i32
  }
  func.func @transform_1(%arg0: i32, %arg1: i32) -> (i32, i32) {
    %c0_i32 = arith.constant 0 : i32
    %c0_i32_0 = arith.constant 0 : i32
    %c0_i32_1 = arith.constant 0 : i32
    return %c0_i32, %c0_i32_0 : i32, i32
  }
  func.func @transform_2(%arg0: i32, %arg1: i32) -> (i32, i32) {
    %c0_i32 = arith.constant 0 : i32
    %c0_i32_0 = arith.constant 0 : i32
    %c0_i32_1 = arith.constant 0 : i32
    return %c0_i32, %c0_i32_0 : i32, i32
  }
  func.func @transform_3(%arg0: i32, %arg1: i32) -> (i32, i32, i32) {
    %c0_i32 = arith.constant 0 : i32
    %c0_i32_0 = arith.constant 0 : i32
    return %arg0, %c0_i32, %arg1 : i32, i32, i32
  }
}

</mosaic_0001>

<bundles_post_ra>
// kernel: tpu_custom_call.1
= control target key start
LH: loop header
LB: loop body
LE: loop exit
PB: predicated region body
PF: predicated region fallthrough
CT: control target
= control target key end

     0   :  { %8 = vsyncpa [#allocation3], 0  ;;  %s732_s0 = inlined_call_operand.hbm [shape: f32[2,4,256], index: 0, kind: input, shape index: {}]   ;;  %s733_s1 = inlined_call_operand.vmem [shape: f32[3,4], index: 1, kind: input, shape index: {}]   ;;  %s734_s2 = inlined_call_operand.vmem [shape: f32[3,1], index: 2, kind: input, shape index: {}]   ;;  %s735_s3 = inlined_call_operand.vmem [shape: f32[2,3,256], index: 3, kind: output, shape index: {}]  }
   0x1   :  { %10 = vsyncpa [#allocation3 + $0x1], 0  ;;  %s601_s12 = smov 0   ;;  %s603_s13 = smov 0  }
   0x2   :  { %s605_s14 = smov 0   ;;  %s607_s15 = smov 0  }
   0x3   :  { %s609_s16 = smov 0   ;;  %s611_s17 = smov 0  }
   0x4 LB: > { %s415_s18 = sadd.s32 4294967295, %s576_s17   ;;  %s28_s19 = sadd.s32 1, %s572_s16  ;;  %s576_s17 = sphi %s611_s17, %s16_s17   ;;  %s572_s16 = sphi %s609_s16, %s745_s16   ;;  %s568_s15 = sphi %s607_s15, %s744_s15   ;;  %s564_s14 = sphi %s605_s14, %s743_s14   ;;  %s560_s13 = sphi %s603_s13, %s742_s13   ;;  %s556_s12 = sphi %s601_s12, %s741_s12  }
   0x5   : > { %p30_p0 = scmp.ge.s32.totalorder %s28_s19, 2  ;;  %s37_s20 = sadd.s32 1, %s564_s14 }
   0x6   : > { %p44_p1 = scmp.ne.s32.totalorder %s564_s14, %s560_s13  ;;  %p45_p2 = scmp.eq.s32.totalorder %s576_s17, 0 }
   0x7   : > { %s747_s19 = smov (%p30_p0, %s28_s19), 0  ;;  %p50_p4 = scmp.ne.s32.totalorder %s560_s13, %s556_s12 }
   0x8   : > { %p637_p3 = por %p45_p2, %p44_p1  ;;  %s32_s22 = ssub.s32 %s572_s16, %s747_s19 }
   0x9   : > { %p51_p5 = scmp.eq.s32.totalorder %s415_s18, 0  ;;  %p35_p6 = scmp.eq.s32.totalorder %s32_s22, 0 }
   0xa   : > { %p439_p8 = scmp.lt.s32.totalorder %s576_s17, 2  ;;  %s150_s25 = sand.u32 1, %s564_s14  }
   0xb   : > { %p644_p7 = por %p51_p5, %p50_p4  ;;  %s431_s26 = sshll.u32 %s572_s16, 7 }
   0xc   : > { %s650_s24 = scalar_select %p35_p6, %s564_s14, %s37_s20  }
   0xd   : > { %s419_s27 = sshll.u32 %s150_s25, 3  ;;  %s657_s30 = scalar_lea.hbm %s732_s0, %s431_s26 }
   0xe   : > { %s154_s4 = scalar_lea.vmem [#allocation2], %s419_s27  ;;  %p661_p9 = pnand %p439_p8, %p637_p3 }
   0xf   : > { %s164_s5 = sshll.u32 %s154_s4, 4  ;;  %s151_s7 = scalar_lea.sflag [#allocation3], %s150_s25  ;;  %s665_s5 = int_to_ptr.vmem [resolvable:$true] %s164_s5 }
  0x10   : > { %s496_s8 = scalar_lea.hbm %s657_s30, 128  ;;  %p498_p13 = pneg %p661_p9 }
  0x11   : > { %p497_p12 = scmp.ne.s32.totalorder %s657_s30, %s496_s8  ;;  %s501_s11 = scalar_lea.hbm %s732_s0, 256 }
  0x12   : > { %p502_p2 = scmp.lt.u32.totalorder %s657_s30, %s732_s0  ;;  %p503_p3 = scmp.lt.u32.totalorder %s501_s11, %s496_s8 }
  0x13   : > { %p499_p0 = pnand %p498_p13, %p497_p12  ;;  %p505_p5 = scmp.lt.u32.totalorder %s496_s8, %s657_s30 }
  0x14   : > { %p504_p4 = por %p503_p3, %p502_p2 }
  0x15   : > { %p500_p1 = pneg %p499_p0 }
  0x16   : > { %p506_p6 = por %p505_p5, %p504_p4 }
  0x18   : > { %p507_p8 = pnand %p506_p6, %p500_p1 }
  0x1a   : > { %510 = shalt.err (!%p507_p8)
}
  0x1b   : > { %s511_s20 = scalar_lea.vmem %s665_s5, 128  ;;  %s578_s21 = smov [#allocation2]  }
  0x1c   : > { %p512_p12 = scmp.ne.s32.totalorder %s665_s5, %s511_s20  ;;  %s516_s22 = sshll.u32 %s578_s21, 4  ;;  %s517_s22 = int_to_ptr.vmem [resolvable:$false] %s516_s22 }
  0x1d   : > { %s518_s25 = scalar_lea.vmem %s517_s22, 256  ;;  %p519_p11 = scmp.lt.s32.totalorder %s665_s5, %s517_s22 }
  0x1e   : > { %p514_p0 = pnand %p512_p12, %p498_p13  ;;  %p520_p2 = scmp.lt.s32.totalorder %s518_s25, %s511_s20 }
  0x20   : > { %p515_p10 = pneg %p514_p0  ;;  %p521_p3 = por %p520_p2, %p519_p11 }
  0x22   : > { %p522_p4 = pnand %p521_p3, %p515_p10 }
  0x24   : > { %525 = shalt.err (!%p522_p4)
}
  0x25   : > { %438 = dma.hbm_to_vmem [thread:$0]  (!%p661_p9), %s657_s30, 128, %s665_s5, %s151_s7  }
  0x26   : > { %p739_p1 = scmp.lt.s32.totalorder %s576_s17, 3  ;;  %p740_p5 = scmp.ge.s32.totalorder %s576_s17, 1 }
  0x28   : > { %p170_p13 = pnand %p740_p5, %p739_p1 }
  0x29   : > { %s175_s26 = sand.u32 (!%p170_p13), 1, %s560_s13  }
  0x2a   : > { %173 = sbr.rel (%p170_p13) target bundleno = 290 (0x122), region = 32  ;;  %s423_s27 = sshll.u32 (!%p170_p13), %s175_s26, 3 }
  0x2b   : > { %s176_s28 = scalar_lea.sflag (!%p170_p13), [#allocation3], %s175_s26  ;;  %s179_s29 = scalar_lea.vmem (!%p170_p13), [#allocation2], %s423_s27 }
  0x31   : > { %551 = dma.done.wait (%p644_p7), %s176_s28, 128  }
  0x32   : > { %553 = vsyncadd (%p644_p7), %s176_s28, 4294967168  ;;  %v579_v0 = vmov 0.0   ;;  %v580_v1 = vmov 0   ;;  %v219_v2 = vld [vmem:[%s179_s29] sm:$0xff]  ;;  %vm231_vm0 = vcmask 1043456   ;;  %vm227_vm1 = vcmask 31744  }
  0x33   : > { %300 = vmatprep.mubr.f32.mxu0 %v579_v0  ;;  %490 = vset.pattern.permute.xlu0 %v580_v1  ;;  %v218_v3 = vld [vmem:[%s734_s2] sm:$0x7]  ;;  %v226_v4 = vcombine.high %v219_v2, %v219_v2  ;;  %p208_p7 = scmp.lt.s32.totalorder %s568_s15, 1 }
  0x34   : > { %222 = vperm.xlu0 %490, %v218_v3   ;;  %v217_v5 = vld [vmem:[%s733_s1] sm:$0x7] }
  0x35   : > { %426 = vmatprep.subr.msk.mxu0 %vm231_vm0, %v226_v4  ;;  %s749_s15 = smov (!%p208_p7, %s568_s15), 1 }
  0x36   : > { %427 = vmatpush1.msk.msra.mxu0 %vm231_vm0, %v219_v2  ;;  %s432_s23 = sshll.u32 %s749_s15, 3 }
  0x37   : > { %428 = vmatmul.mubr.msk.f32.vlgmr.msra.gmra.mrb[0].mxu0 %vm227_vm1, %v217_v5  ;;  %s215_s9 = scalar_lea.vmem %s735_s3, %s432_s23 }
  0xb3   : > { %v223_v6 = vpop.permute.xlu0 %222 }
 0x10a   : > { %v302_v7 = vpop.f32.mrb[0].mxu0 }
 0x10b   : > { %v303_v8 = vadd.f32 %v302_v7, %v223_v6  ;;  %v304_v9 = vpop.f32.mrb[1].mxu0 }
 0x10c   : > { %v305_v10 = vadd.f32 %v304_v9, %v223_v6 }
 0x10d   : > { %v307_v11 = vmul.f32 0.5, %v303_v8 }
 0x10e   : > { %v308_v12 = vmul.f32 0.5, %v305_v10 }
 0x10f   : > { %492 = vtanh.f32 %v307_v11 }
 0x110   : > { %494 = vtanh.f32 %v308_v12 }
 0x119   : > { %v493_v13 = vpop.eup %492 }
 0x11a   : > { %v495_v14 = vpop.eup %494  ;;  %v311_v15 = vmul.f32 0.5, %v493_v13 }
 0x11b   : > { %v312_v16 = vmul.f32 0.5, %v495_v14 }
 0x11c   : > { %v313_v17 = vadd.f32 0.5, %v311_v15 }
 0x11d   : > { %v314_v18 = vadd.f32 0.5, %v312_v16 }
 0x11f   : > { %v317_v19 = vcombine.low %v313_v17, %v314_v18 }
 0x121   : > { %319 = vst [vmem:[%s215_s9] sm:$0x77] %v317_v19 }
 0x122 PF: > { %s16_s17 = sadd.s32 1, %s576_s17   ;;  %s741_s12 = smov %s560_s13 }
 0x123   : > { %p13_p9 = scmp.ge.s32.totalorder %s16_s17, 4   ;;  %s742_s13 = smov %s564_s14 }
 0x124   : > { %s743_s14 = smov %s650_s24  ;;  %s744_s15 = smov %s572_s16 }
 0x125   : > { %s745_s16 = smov %s747_s19  ;;  %15 = sbr.rel (!%p13_p9) target bundleno = 4 (0x4), region = 72 }
 0x12c   :  { %350 = vsyncpa [#allocation3], 1 }
 0x12d   :  { %352 = vsyncpa [#allocation3 + $0x1], 1 }

</bundles_post_ra>
